<compile_context>
chip_gen: v5e
topology: v5e:2x2
jax: 0.10.0
libtpu: 0.0.40
codegen_flags: <defaults>
</compile_context>

<pallas_src>
import math
import functools
from typing import NamedTuple

import jax
import jax.numpy as jnp
from jax.experimental import pallas as pl
from jax.experimental.pallas import tpu as pltpu


TILE_H = 128  # lane width; gate slices inside a block stay 128-lane aligned


def _round_up(n, m):
    return ((n + m - 1) // m) * m


def _cdiv(a, b):
    return -(-a // b)


def _vmem_capacity_bytes():
    """Physical VMEM of the local chip; conservative fallback if unqueryable."""
    try:
        info = pltpu.get_tpu_info()
        cap = getattr(info, "vmem_capacity_bytes", None)
        if cap:
            return int(cap)
    except Exception:
        pass
    return 64 * 1024 * 1024  # v7x per-TensorCore VMEM (smallest current part)


class DLSTMMeta(NamedTuple):
    input_size: int
    hidden_size: int
    tile_h: int
    i_pad: int         # padded rows of w_ih / lanes of x
    h_pad: int         # padded hidden size (rows of w_hh / lanes of hx, cx, hy, cy)
    chunk_tiles: int   # TILE_H tiles of hidden units handled per grid step
    n_chunks: int      # hidden-dim grid extent


def _choose_layout(input_size, hidden_size, tile_h, max_weight_block_bytes):
    i_pad = _round_up(max(input_size, 1), 128)
    n_tiles = _cdiv(hidden_size, tile_h)
    h_pad0 = n_tiles * tile_h
    # bf16 weight bytes (w_ih + w_hh rows) for one TILE_H-wide group of 4 gates.
    bytes_per_tile = (i_pad + h_pad0) * 4 * tile_h * 2
    c_max = max(1, int(max_weight_block_bytes) // bytes_per_tile)
    chunk = max(1, min(c_max, n_tiles))
    if n_tiles >= 2:
        # Keep >= 2 grid steps so v7x's two TensorCores both get work.
        n_chunks = max(2, _cdiv(n_tiles, chunk))
    else:
        n_chunks = 1
    chunk = _cdiv(n_tiles, n_chunks)
    h_pad = n_chunks * chunk * tile_h
    return i_pad, h_pad, chunk, n_chunks


def pack_dlstm_weights(weight_ih, weight_hh, bias_ih, bias_hh,
                       tile_h=TILE_H, max_weight_block_bytes=None):
    """One-time weight preparation (do this at module init, not per step).

    Returns:
      w_ih_packed : [i_pad, n_chunks*4*chunk*tile_h] bf16
      w_hh_packed : [h_pad, n_chunks*4*chunk*tile_h] bf16
      b_packed    : [1,     n_chunks*4*chunk*tile_h] f32
      meta        : static layout info (plain Python ints)
    Column layout per chunk is (gate, chunk*tile_h) so each gate occupies a
    contiguous, 128-lane-aligned span inside every grid step's block.
    """
    four_h, input_size = weight_ih.shape
    hidden_size = weight_hh.shape[1]
    assert four_h == 4 * hidden_size
    if max_weight_block_bytes is None:
        # ~30% of physical VMEM per weight buffer -> ~60% when double-buffered,
        # leaving headroom for activations / outputs / compiler scratch.
        max_weight_block_bytes = int(0.30 * _vmem_capacity_bytes())

    I, H, T = input_size, hidden_size, tile_h
    i_pad, h_pad, chunk, n_chunks = _choose_layout(I, H, T, max_weight_block_bytes)
    gw = chunk * T                       # lanes per gate inside one block
    cols = n_chunks * 4 * gw

    def pack_w(w, rows, rows_pad):
        # torch weight is [4H, rows]; columns end up in gate order [i, f, g, o].
        w = jnp.transpose(w).astype(jnp.float32)                     # [rows, 4H]
        w = w.reshape(rows, 4, H)
        w = jnp.pad(w, ((0, rows_pad - rows), (0, 0), (0, h_pad - H)))
        w = w.reshape(rows_pad, 4, n_chunks, gw).transpose(0, 2, 1, 3)
        return w.reshape(rows_pad, cols).astype(jnp.bfloat16)

    w_ih_packed = pack_w(weight_ih, I, i_pad)
    w_hh_packed = pack_w(weight_hh, H, h_pad)

    if bias_ih is None:
        bias = jnp.zeros((4 * H,), jnp.float32)
    else:
        bias = (bias_ih + bias_hh).astype(jnp.float32)
    bias = bias.reshape(4, H)
    bias = jnp.pad(bias, ((0, 0), (0, h_pad - H)))
    bias = bias.reshape(4, n_chunks, gw).transpose(1, 0, 2)
    b_packed = bias.reshape(1, cols)

    meta = DLSTMMeta(I, H, T, i_pad, h_pad, chunk, n_chunks)
    return w_ih_packed, w_hh_packed, b_packed, meta


def _dlstm_kernel(x_ref, hx_ref, wih_ref, whh_ref, bias_ref, cx_ref, *rest,
                  gate_w, apply_decay):
    if apply_decay:
        decay_ref, hy_ref, cy_ref = rest
    else:
        hy_ref, cy_ref = rest
    G = gate_w

    # Two MXU passes (x and hx kept separate => no wrapper-side concat pass),
    # bf16 operands with f32 accumulation; all gate math stays in f32.
    gates = jnp.dot(x_ref[...], wih_ref[...], preferred_element_type=jnp.float32)
    gates = gates + jnp.dot(hx_ref[...], whh_ref[...],
                            preferred_element_type=jnp.float32)
    gates = gates + bias_ref[...]

    # Lane-aligned gate slices (G is a multiple of 128).
    ingate     = jax.nn.sigmoid(gates[:, 0 * G:1 * G])
    forgetgate = jax.nn.sigmoid(gates[:, 1 * G:2 * G])
    cellgate   = jnp.tanh(gates[:, 2 * G:3 * G])
    outgate    = jax.nn.sigmoid(gates[:, 3 * G:4 * G])

    if apply_decay:
        forgetgate = forgetgate * decay_ref[...]   # [B,1] broadcast over lanes

    cy = forgetgate * cx_ref[...].astype(jnp.float32) + ingate * cellgate
    hy = outgate * jnp.tanh(cy)

    hy_ref[...] = hy.astype(hy_ref.dtype)
    cy_ref[...] = cy.astype(cy_ref.dtype)


def _estimate_vmem_bytes(meta, b_block, hy_itemsize, cy_itemsize, cx_itemsize,
                         apply_decay):
    gw = meta.chunk_tiles * meta.tile_h
    cols = 4 * gw
    w = (meta.i_pad + meta.h_pad) * cols * 2 * 2            # bf16, double-buffered
    act = b_block * (meta.i_pad + meta.h_pad) * 2 * 2        # x + hx buffers
    bias = cols * 4 * 2
    cx = b_block * gw * cx_itemsize * 2
    outs = b_block * gw * (hy_itemsize + cy_itemsize) * 2
    dec = (b_block * 4 * 2) if apply_decay else 0
    return w + act + bias + cx + outs + dec


def dlstm_cell_pallas(x, time_dis, hx, cx, a, b, c,
                      w_ih_packed, w_hh_packed, b_packed, meta: DLSTMMeta,
                      mode="exp", return_padded=False):
    """Pallas implementation of disLSTMCell(input, time_dis, (hx, cx), a, b, c, ...)."""
    B = x.shape[0]
    I, H = meta.input_size, meta.hidden_size
    assert x.shape == (B, I) and hx.shape == (B, H) and cx.shape == (B, H)
    T, i_pad, h_pad = meta.tile_h, meta.i_pad, meta.h_pad
    chunk, n_chunks = meta.chunk_tiles, meta.n_chunks
    gw = chunk * T
    hy_dtype = hx.dtype
    cy_dtype = cx.dtype

    # Batch padding / blocking: 16 keeps bf16 sublane packing dense; a second
    # parallel grid axis over batch (blocks of 256) kicks in for large B.
    b_pad = _round_up(max(B, 1), 16)
    if b_pad > 256:
        b_block = 256
        b_pad = _round_up(b_pad, b_block)
    else:
        b_block = b_pad
    n_b = b_pad // b_block

    # Matmul operands in bf16; cx stays in its state dtype (upcast in-kernel).
    x_p = jnp.pad(x, ((0, b_pad - B), (0, i_pad - I))).astype(jnp.bfloat16)
    hx_p = jnp.pad(hx, ((0, b_pad - B), (0, h_pad - H))).astype(jnp.bfloat16)
    cx_p = jnp.pad(cx, ((0, b_pad - B), (0, h_pad - H)))

    apply_decay = mode != "none"
    args = [x_p, hx_p, w_ih_packed, w_hh_packed, b_packed, cx_p]
    in_specs = [
        pl.BlockSpec((b_block, i_pad), lambda j, bi: (bi, 0)),    # x (batch block)
        pl.BlockSpec((b_block, h_pad), lambda j, bi: (bi, 0)),    # hx (batch block)
        pl.BlockSpec((i_pad, 4 * gw), lambda j, bi: (0, j)),      # w_ih chunk
        pl.BlockSpec((h_pad, 4 * gw), lambda j, bi: (0, j)),      # w_hh chunk
        pl.BlockSpec((1, 4 * gw), lambda j, bi: (0, j)),          # bias chunk
        pl.BlockSpec((b_block, gw), lambda j, bi: (bi, j)),       # cx chunk
    ]
    if apply_decay:
        # Time-distance decay: one tiny transcendental per batch row, hoisted
        # out of the kernel and passed as a [B, 1] vector.
        td = time_dis.reshape(B, 1).astype(jnp.float32)
        if mode == "exp":
            decay = c.reshape(()) * a.reshape(()) ** (b.reshape(()) * td)
        elif mode == "log":
            decay = 1.0 / jnp.log(jnp.float32(math.e) + td)
        else:
            raise ValueError(f"unknown mode: {mode}")
        decay_p = jnp.pad(decay, ((0, b_pad - B), (0, 0)))
        args.append(decay_p)
        in_specs.append(pl.BlockSpec((b_block, 1), lambda j, bi: (bi, 0)))

    out_specs = (
        pl.BlockSpec((b_block, gw), lambda j, bi: (bi, j)),
        pl.BlockSpec((b_block, gw), lambda j, bi: (bi, j)),
    )
    out_shape = (
        jax.ShapeDtypeStruct((b_pad, h_pad), hy_dtype),
        jax.ShapeDtypeStruct((b_pad, h_pad), cy_dtype),
    )

    est = _estimate_vmem_bytes(meta, b_block,
                               jnp.dtype(hy_dtype).itemsize,
                               jnp.dtype(cy_dtype).itemsize,
                               jnp.dtype(cx_p.dtype).itemsize,
                               apply_decay)
    cap = _vmem_capacity_bytes()
    vmem_limit = int(min(int(cap * 0.9), max(int(est * 1.6), 32 * 1024 * 1024)))

    kernel = functools.partial(_dlstm_kernel, gate_w=gw, apply_decay=apply_decay)

    hy_p, cy_p = pl.pallas_call(
        kernel,
        grid=(n_chunks, n_b),
        in_specs=in_specs,
        out_specs=out_specs,
        out_shape=out_shape,
        compiler_params=pltpu.CompilerParams(
            dimension_semantics=("parallel", "parallel"),
            vmem_limit_bytes=vmem_limit),
    )(*args)

    if return_padded:
        # Padded hidden lanes of cy/hy stay exactly zero (zero weights/bias =>
        # sigmoid(0)=0.5, tanh(0)=0 => cy_pad = 0.5*0 + 0.5*0 = 0), so the
        # padded layout can be carried across timesteps without re-slicing.
        return hy_p, cy_p
    return hy_p[:B, :H], cy_p[:B, :H]


def dlstm_cell_ref(x, time_dis, hx, cx, a, b, c,
                   weight_ih, weight_hh, bias_ih, bias_hh, mode="exp"):
    """Pure-JAX reference (mirrors the torch disLSTMCell semantics)."""
    H = hx.shape[1]
    gates = x @ weight_ih.T + hx @ weight_hh.T
    if bias_ih is not None:
        gates = gates + bias_ih + bias_hh
    i = jax.nn.sigmoid(gates[:, 0 * H:1 * H])
    f = jax.nn.sigmoid(gates[:, 1 * H:2 * H])
    g = jnp.tanh(gates[:, 2 * H:3 * H])
    o = jax.nn.sigmoid(gates[:, 3 * H:4 * H])
    td = time_dis.reshape(-1, 1)
    if mode == "exp":
        decay = c * a ** (b * td)
    elif mode == "log":
        decay = 1.0 / jnp.log(math.e + td)
    else:
        decay = jnp.ones_like(td)
    f = f * decay
    cy = f * cx + i * g
    hy = o * jnp.tanh(cy)
    return hy, cy


if __name__ == "__main__":
    master_key = jax.random.PRNGKey(0)

    def run_config(key, B, input_size, hidden_size):
        keys = jax.random.split(key, 11)
        stdv = 1.0 / math.sqrt(hidden_size)
        weight_ih = jax.random.uniform(keys[0], (4 * hidden_size, input_size),
                                       minval=-stdv, maxval=stdv, dtype=jnp.float32)
        weight_hh = jax.random.uniform(keys[1], (4 * hidden_size, hidden_size),
                                       minval=-stdv, maxval=stdv, dtype=jnp.float32)
        bias_ih = jax.random.uniform(keys[2], (4 * hidden_size,),
                                     minval=-stdv, maxval=stdv, dtype=jnp.float32)
        bias_hh = jax.random.uniform(keys[3], (4 * hidden_size,),
                                     minval=-stdv, maxval=stdv, dtype=jnp.float32)
        a = jax.random.uniform(keys[4], (1,), minval=0.89, maxval=0.9, dtype=jnp.float32)
        b = jax.random.uniform(keys[5], (1,), minval=0.0, maxval=1.0, dtype=jnp.float32)
        c = jax.random.uniform(keys[6], (1,), minval=1.0, maxval=1.01, dtype=jnp.float32)

        x = jax.random.normal(keys[7], (B, input_size), dtype=jnp.float32)
        time_dis = jax.random.uniform(keys[8], (B,), minval=0.0, maxval=5.0,
                                      dtype=jnp.float32)
        hx = jax.random.normal(keys[9], (B, hidden_size), dtype=jnp.float32) * 0.1
        cx = jax.random.normal(keys[10], (B, hidden_size), dtype=jnp.float32) * 0.1

        # One-time weight packing (in real use, cache this at module init).
        w_ih_p, w_hh_p, b_p, meta = pack_dlstm_weights(weight_ih, weight_hh,
                                                       bias_ih, bias_hh)

        for mode in ("exp", "log", "none"):
            hy, cy = dlstm_cell_pallas(x, time_dis, hx, cx, a, b, c,
                                       w_ih_p, w_hh_p, b_p, meta, mode=mode)
            jax.block_until_ready((hy, cy))

            hy_ref, cy_ref = dlstm_cell_ref(x, time_dis, hx, cx, a, b, c,
                                            weight_ih, weight_hh, bias_ih, bias_hh,
                                            mode=mode)
            assert hy.dtype == hx.dtype and cy.dtype == cx.dtype
            # bf16 matmul operands (f32 accumulation) => slightly looser tolerance.
            assert jnp.allclose(hy, hy_ref, atol=2e-2, rtol=2e-2), (hidden_size, mode)
            assert jnp.allclose(cy, cy_ref, atol=2e-2, rtol=2e-2), (hidden_size, mode)

    k1, k2 = jax.random.split(master_key)
    run_config(k1, B=8, input_size=16, hidden_size=32)    # single-chunk path
    run_config(k2, B=8, input_size=24, hidden_size=300)   # multi-chunk + padding path
    print("KERNEL_OK")
</pallas_src>

<mosaic_0001>
module attributes {stable_mosaic.version = 11 : i64} {
  func.func @_dlstm_kernel(%arg0: i32, %arg1: i32, %arg2: memref<16x128xbf16, #tpu.memory_space<vmem>>, %arg3: memref<16x128xbf16, #tpu.memory_space<vmem>>, %arg4: memref<128x512xbf16, #tpu.memory_space<vmem>>, %arg5: memref<128x512xbf16, #tpu.memory_space<vmem>>, %arg6: memref<1x512xf32, #tpu.memory_space<vmem>>, %arg7: memref<16x128xf32, #tpu.memory_space<vmem>>, %arg8: memref<16x1xf32, #tpu.memory_space<vmem>>, %arg9: memref<16x128xf32, #tpu.memory_space<vmem>>, %arg10: memref<16x128xf32, #tpu.memory_space<vmem>>) attributes {dimension_semantics = [#tpu.dimension_semantics<parallel>, #tpu.dimension_semantics<parallel>], iteration_bounds = array<i64: 1, 1>, scalar_prefetch = 0 : i64, scratch_operands = 0 : i64, tpu.core_type = #tpu.core_type<tc>, window_params = [{transform_indices = @transform_0, window_bounds = array<i64: 16, 128>}, {transform_indices = @transform_1, window_bounds = array<i64: 16, 128>}, {transform_indices = @transform_2, window_bounds = array<i64: 128, 512>}, {transform_indices = @transform_3, window_bounds = array<i64: 128, 512>}, {transform_indices = @transform_4, window_bounds = array<i64: 1, 512>}, {transform_indices = @transform_5, window_bounds = array<i64: 16, 128>}, {transform_indices = @transform_6, window_bounds = array<i64: 16, 1>}, {transform_indices = @transform_7, window_bounds = array<i64: 16, 128>}, {transform_indices = @transform_8, window_bounds = array<i64: 16, 128>}]} {
    %c0 = arith.constant 0 : index
    %c0_0 = arith.constant 0 : index
    %0 = vector.load %arg2[%c0, %c0_0] : memref<16x128xbf16, #tpu.memory_space<vmem>>, vector<16x128xbf16>
    %c0_1 = arith.constant 0 : index
    %c0_2 = arith.constant 0 : index
    %1 = vector.load %arg4[%c0_1, %c0_2] : memref<128x512xbf16, #tpu.memory_space<vmem>>, vector<128x512xbf16>
    %cst = arith.constant dense<0.000000e+00> : vector<16x512xf32>
    %2 = tpu.matmul %0, %1, %cst {dimension_numbers = #tpu.dot_dimension_numbers<[1], [0], [0], [1], [0, 0, 1, 1], [], []>} : vector<16x128xbf16>, vector<128x512xbf16>, vector<16x512xf32> -> vector<16x512xf32>
    %c0_3 = arith.constant 0 : index
    %c0_4 = arith.constant 0 : index
    %3 = vector.load %arg3[%c0_3, %c0_4] : memref<16x128xbf16, #tpu.memory_space<vmem>>, vector<16x128xbf16>
    %c0_5 = arith.constant 0 : index
    %c0_6 = arith.constant 0 : index
    %4 = vector.load %arg5[%c0_5, %c0_6] : memref<128x512xbf16, #tpu.memory_space<vmem>>, vector<128x512xbf16>
    %cst_7 = arith.constant dense<0.000000e+00> : vector<16x512xf32>
    %5 = tpu.matmul %3, %4, %cst_7 {dimension_numbers = #tpu.dot_dimension_numbers<[1], [0], [0], [1], [0, 0, 1, 1], [], []>} : vector<16x128xbf16>, vector<128x512xbf16>, vector<16x512xf32> -> vector<16x512xf32>
    %6 = arith.addf %2, %5 : vector<16x512xf32>
    %c0_8 = arith.constant 0 : index
    %c0_9 = arith.constant 0 : index
    %7 = vector.load %arg6[%c0_8, %c0_9] : memref<1x512xf32, #tpu.memory_space<vmem>>, vector<1x512xf32>
    %8 = vector.broadcast %7 : vector<1x512xf32> to vector<16x512xf32>
    %9 = arith.addf %6, %8 : vector<16x512xf32>
    %10 = vector.extract_strided_slice %9 {offsets = [0, 0], sizes = [16, 128], strides = [1, 1]} : vector<16x512xf32> to vector<16x128xf32>
    %11 = arith.negf %10 : vector<16x128xf32>
    %12 = math.exp %11 : vector<16x128xf32>
    %cst_10 = arith.constant 1.000000e+00 : f32
    %13 = vector.broadcast %cst_10 : f32 to vector<16x128xf32>
    %14 = arith.addf %13, %12 : vector<16x128xf32>
    %15 = arith.divf %13, %14 : vector<16x128xf32>
    %16 = vector.extract_strided_slice %9 {offsets = [0, 128], sizes = [16, 128], strides = [1, 1]} : vector<16x512xf32> to vector<16x128xf32>
    %17 = arith.negf %16 : vector<16x128xf32>
    %18 = math.exp %17 : vector<16x128xf32>
    %cst_11 = arith.constant 1.000000e+00 : f32
    %19 = vector.broadcast %cst_11 : f32 to vector<16x128xf32>
    %20 = arith.addf %19, %18 : vector<16x128xf32>
    %21 = arith.divf %19, %20 : vector<16x128xf32>
    %22 = vector.extract_strided_slice %9 {offsets = [0, 256], sizes = [16, 128], strides = [1, 1]} : vector<16x512xf32> to vector<16x128xf32>
    %23 = math.tanh %22 : vector<16x128xf32>
    %24 = vector.extract_strided_slice %9 {offsets = [0, 384], sizes = [16, 128], strides = [1, 1]} : vector<16x512xf32> to vector<16x128xf32>
    %25 = arith.negf %24 : vector<16x128xf32>
    %26 = math.exp %25 : vector<16x128xf32>
    %cst_12 = arith.constant 1.000000e+00 : f32
    %27 = vector.broadcast %cst_12 : f32 to vector<16x128xf32>
    %28 = arith.addf %27, %26 : vector<16x128xf32>
    %29 = arith.divf %27, %28 : vector<16x128xf32>
    %c0_13 = arith.constant 0 : index
    %c0_14 = arith.constant 0 : index
    %30 = vector.load %arg8[%c0_13, %c0_14] : memref<16x1xf32, #tpu.memory_space<vmem>>, vector<16x1xf32>
    %31 = vector.broadcast %30 : vector<16x1xf32> to vector<16x128xf32>
    %32 = arith.mulf %21, %31 : vector<16x128xf32>
    %c0_15 = arith.constant 0 : index
    %c0_16 = arith.constant 0 : index
    %33 = vector.load %arg7[%c0_15, %c0_16] : memref<16x128xf32, #tpu.memory_space<vmem>>, vector<16x128xf32>
    %34 = arith.mulf %32, %33 : vector<16x128xf32>
    %35 = arith.mulf %15, %23 : vector<16x128xf32>
    %36 = arith.addf %34, %35 : vector<16x128xf32>
    %37 = math.tanh %36 : vector<16x128xf32>
    %38 = arith.mulf %29, %37 : vector<16x128xf32>
    %c0_17 = arith.constant 0 : index
    %c0_18 = arith.constant 0 : index
    %39 = vector.load %arg9[%c0_17, %c0_18] : memref<16x128xf32, #tpu.memory_space<vmem>>, vector<16x128xf32>
    tpu.vector_store %arg9[%c0_17, %c0_18], %38 {strides = array<i32>} : memref<16x128xf32, #tpu.memory_space<vmem>>, vector<16x128xf32>,
    %c0_19 = arith.constant 0 : index
    %c0_20 = arith.constant 0 : index
    %40 = vector.load %arg10[%c0_19, %c0_20] : memref<16x128xf32, #tpu.memory_space<vmem>>, vector<16x128xf32>
    tpu.vector_store %arg10[%c0_19, %c0_20], %36 {strides = array<i32>} : memref<16x128xf32, #tpu.memory_space<vmem>>, vector<16x128xf32>,
    return
  }
  func.func @transform_0(%arg0: i32, %arg1: i32) -> (i32, i32) {
    %c0_i32 = arith.constant 0 : i32
    %c0_i32_0 = arith.constant 0 : i32
    return %arg1, %c0_i32 : i32, i32
  }
  func.func @transform_1(%arg0: i32, %arg1: i32) -> (i32, i32) {
    %c0_i32 = arith.constant 0 : i32
    %c0_i32_0 = arith.constant 0 : i32
    return %arg1, %c0_i32 : i32, i32
  }
  func.func @transform_2(%arg0: i32, %arg1: i32) -> (i32, i32) {
    %c0_i32 = arith.constant 0 : i32
    %c0_i32_0 = arith.constant 0 : i32
    return %c0_i32, %arg0 : i32, i32
  }
  func.func @transform_3(%arg0: i32, %arg1: i32) -> (i32, i32) {
    %c0_i32 = arith.constant 0 : i32
    %c0_i32_0 = arith.constant 0 : i32
    return %c0_i32, %arg0 : i32, i32
  }
  func.func @transform_4(%arg0: i32, %arg1: i32) -> (i32, i32) {
    %c0_i32 = arith.constant 0 : i32
    %c0_i32_0 = arith.constant 0 : i32
    return %c0_i32, %arg0 : i32, i32
  }
  func.func @transform_5(%arg0: i32, %arg1: i32) -> (i32, i32) {
    %c0_i32 = arith.constant 0 : i32
    return %arg1, %arg0 : i32, i32
  }
  func.func @transform_6(%arg0: i32, %arg1: i32) -> (i32, i32) {
    %c0_i32 = arith.constant 0 : i32
    %c0_i32_0 = arith.constant 0 : i32
    return %arg1, %c0_i32 : i32, i32
  }
  func.func @transform_7(%arg0: i32, %arg1: i32) -> (i32, i32) {
    %c0_i32 = arith.constant 0 : i32
    return %arg1, %arg0 : i32, i32
  }
  func.func @transform_8(%arg0: i32, %arg1: i32) -> (i32, i32) {
    %c0_i32 = arith.constant 0 : i32
    return %arg1, %arg0 : i32, i32
  }
}

</mosaic_0001>

<bundles_post_ra>
// kernel: tpu_custom_call.1
= control target key start
LH: loop header
LB: loop body
LE: loop exit
PB: predicated region body
PF: predicated region fallthrough
CT: control target
= control target key end

     0   :  { %14 = vsyncpa [#allocation3], 0  ;;  %s1543_s0 = inlined_call_operand.hbm [shape: bf16[16,128], index: 0, kind: input, shape index: {}]   ;;  %s1544_s1 = inlined_call_operand.hbm [shape: bf16[16,128], index: 1, kind: input, shape index: {}]   ;;  %s1545_s2 = inlined_call_operand.hbm [shape: bf16[128,512], index: 2, kind: input, shape index: {}]   ;;  %s1546_s3 = inlined_call_operand.hbm [shape: bf16[128,512], index: 3, kind: input, shape index: {}]   ;;  %s1547_s4 = inlined_call_operand.hbm [shape: f32[1,512], index: 4, kind: input, shape index: {}]   ;;  %s1548_s5 = inlined_call_operand.vmem [shape: f32[16,128], index: 5, kind: input, shape index: {}]   ;;  %s1549_s6 = inlined_call_operand.vmem [shape: f32[16,1], index: 6, kind: input, shape index: {}]   ;;  %s1550_s7 = inlined_call_operand.hbm [shape: f32[16,128], index: 7, kind: output, shape index: {0}]   ;;  %s1551_s8 = inlined_call_operand.hbm [shape: f32[16,128], index: 8, kind: output, shape index: {1}]  }
   0x1   :  { %15 = vsyncpa [#allocation6], 0 }
   0x2   :  { %16 = vsyncpa [#allocation9], 0 }
   0x3   :  { %17 = vsyncpa [#allocation4], 0 }
   0x4   :  { %18 = vsyncpa [#allocation13], 0  ;;  %s36_s29 = sshll.u32 %s1544_s1, 4  ;;  %s1382_s30 = smov [#allocation5]   ;;  %s37_s29 = int_to_ptr.hbm [resolvable:$true] %s36_s29 }
   0x5   :  { %s38_s9 = sshll.u32 %s1382_s30, 4  ;;  %s1383_s10 = smov 64   ;;  %s39_s9 = int_to_ptr.vmem [resolvable:$true] %s38_s9 }
   0x6   :  { %s1384_s11 = smov 4   ;;  %s62_s14 = sshll.u32 %s1546_s3, 4  ;;  %s63_s14 = int_to_ptr.hbm [resolvable:$true] %s62_s14 }
   0x7   :  { %44 = dma.hbm_to_vmem [thread:$0]  %s37_s29, 128, %s39_s9, [#allocation6], %s1383_s10, %s1383_s10, %s1384_s11  }
   0x8   :  { %s1385_s15 = smov [#allocation8]   ;;  %s23_s19 = sshll.u32 %s1543_s0, 4  ;;  %s24_s19 = int_to_ptr.hbm [resolvable:$true] %s23_s19 }
   0x9   :  { %s64_s16 = sshll.u32 %s1385_s15, 4  ;;  %s1386_s1 = smov 256   ;;  %s65_s16 = int_to_ptr.vmem [resolvable:$true] %s64_s16 }
   0xa   :  { %s1387_s20 = smov 16   ;;  %s49_s23 = sshll.u32 %s1545_s2, 4  ;;  %s50_s23 = int_to_ptr.hbm [resolvable:$true] %s49_s23 }
   0xb   :  { %70 = dma.hbm_to_vmem [thread:$0]  %s63_s14, 4096, %s65_s16, [#allocation9], %s1386_s1, %s1386_s1, %s1387_s20  }
   0xc   :  { %s1388_s24 = smov [#allocation2]   ;;  %s1389_s3 = smov [#allocation7]  }
   0xd   :  { %s25_s25 = sshll.u32 %s1388_s24, 4  ;;  %s51_s26 = sshll.u32 %s1389_s3, 4  ;;  %s26_s25 = int_to_ptr.vmem [resolvable:$true] %s25_s25  ;;  %s52_s26 = int_to_ptr.vmem [resolvable:$true] %s51_s26 }
   0xe   :  { %31 = dma.hbm_to_vmem [thread:$0]  %s24_s19, 128, %s26_s25, [#allocation3], %s1383_s10, %s1383_s10, %s1384_s11  }
   0xf   :  { %s76_s0 = sshll.u32 %s1547_s4, 4  ;;  %s1390_s29 = smov [#allocation10]   ;;  %s77_s0 = int_to_ptr.hbm [resolvable:$true] %s76_s0 }
  0x10   :  { %57 = dma.hbm_to_vmem [thread:$0]  %s50_s23, 4096, %s52_s26, [#allocation6], %s1386_s1, %s1386_s1, %s1387_s20  }
  0x11   :  { %s78_s30 = sshll.u32 %s1390_s29, 4  ;;  %s79_s30 = int_to_ptr.vmem [resolvable:$true] %s78_s30 }
  0x12   :  { %81 = dma.hbm_to_vmem [thread:$0]  %s77_s0, 64, %s79_s30, [#allocation9]  }
  0x13   :  { %1372 = dma.done.wait [#allocation3], 128  }
  0x14   :  { %1373 = vsyncadd [#allocation3], 4294967168 }
  0x15   :  { %1374 = dma.done.wait [#allocation6], 4224  }
  0x16   :  { %1375 = vsyncadd [#allocation6], 4294963072 }
  0x17   :  { %1376 = dma.done.wait [#allocation9], 4160  }
  0x18   :  { %1377 = vsyncadd [#allocation9], 4294963136  ;;  %v939_v0 = vld [vmem:[#allocation8 + $0xe0] sm:$0xf]  ;;  %v1155_v1 = vld [vmem:[#allocation8 + $0xec] sm:$0xf0] }
  0x19   :  { %v1153_v2 = vld [vmem:[#allocation8 + $0xe4] sm:$0xf]  ;;  %v940_v3 = vor.u32 %v1155_v1, %v939_v0  ;;  %v941_v4 = vld [vmem:[#allocation8 + $0xf0] sm:$0xf0]  ;;  %v947_v5 = vld [vmem:[#allocation8 + $0xe8] sm:$0xf] }
  0x1a   :  { %v1156_v6 = vld [vmem:[#allocation8 + $0xf4] sm:$0xf0]  ;;  %v944_v7 = vor.u32 %v1153_v2, %v941_v4  ;;  %v1154_v9 = vld [vmem:[#allocation8 + $0xec] sm:$0xf]  ;;  %v949_v10 = vld [vmem:[#allocation8 + $0xf8] sm:$0xf0] }
  0x1b   :  { %v948_v8 = vor.u32 %v1156_v6, %v947_v5  ;;  %v923_v11 = vld [vmem:[#allocation8 + $0xc0] sm:$0xf]  ;;  %340 = vmatpush.bf16.msra.mxu0 %v940_v3  ;;  %v952_v12 = vor.u32 %v1154_v9, %v949_v10  ;;  %v1151_v13 = vld [vmem:[#allocation8 + $0xcc] sm:$0xf0]  ;;  %v1149_v14 = vld [vmem:[#allocation8 + $0xc4] sm:$0xf] }
  0x1c   :  { %v925_v15 = vld [vmem:[#allocation8 + $0xd0] sm:$0xf0]  ;;  %354 = vmatpush.bf16.msra.mxu1 %v944_v7  ;;  %v924_v16 = vor.u32 %v1151_v13, %v923_v11  ;;  %v931_v18 = vld [vmem:[#allocation8 + $0xc8] sm:$0xf]  ;;  %v1152_v19 = vld [vmem:[#allocation8 + $0xd4] sm:$0xf0] }
  0x1d   :  { %368 = vmatpush.bf16.msra.mxu2 %v948_v8  ;;  %v928_v17 = vor.u32 %v1149_v14, %v925_v15  ;;  %v1150_v20 = vld [vmem:[#allocation8 + $0xcc] sm:$0xf]  ;;  %382 = vmatpush.bf16.msra.mxu3 %v952_v12  ;;  %v932_v21 = vor.u32 %v1152_v19, %v931_v18  ;;  %v933_v22 = vld [vmem:[#allocation8 + $0xd8] sm:$0xf0]  ;;  %v907_v23 = vld [vmem:[#allocation8 + $0xa0] sm:$0xf] }
  0x1e   :  { %v1147_v24 = vld [vmem:[#allocation8 + $0xac] sm:$0xf0]  ;;  %v936_v25 = vor.u32 %v1150_v20, %v933_v22  ;;  %v1145_v26 = vld [vmem:[#allocation8 + $0xa4] sm:$0xf]  ;;  %v909_v27 = vld [vmem:[#allocation8 + $0xb0] sm:$0xf0] }
  0x1f   :  { %v915_v28 = vld [vmem:[#allocation8 + $0xa8] sm:$0xf]  ;;  %341 = vmatpush.bf16.msra.mxu0 %v924_v16  ;;  %v908_v29 = vor.u32 %v1147_v24, %v907_v23  ;;  %v1148_v30 = vld [vmem:[#allocation8 + $0xb4] sm:$0xf0]  ;;  %v1146_v31 = vld [vmem:[#allocation8 + $0xac] sm:$0xf]  ;;  %v912_v33 = vor.u32 %v1145_v26, %v909_v27 }
  0x20   :  { %v917_v32 = vld [vmem:[#allocation8 + $0xb8] sm:$0xf0]  ;;  %355 = vmatpush.bf16.msra.mxu1 %v928_v17  ;;  %v916_v34 = vor.u32 %v1148_v30, %v915_v28  ;;  %v891_v35 = vld [vmem:[#allocation8 + $0x80] sm:$0xf]  ;;  %v1143_v36 = vld [vmem:[#allocation8 + $0x8c] sm:$0xf0] }
  0x21   :  { %369 = vmatpush.bf16.msra.mxu2 %v932_v21  ;;  %v1141_v37 = vld [vmem:[#allocation8 + $0x84] sm:$0xf]  ;;  %383 = vmatpush.bf16.msra.mxu3 %v936_v25  ;;  %v920_v38 = vor.u32 %v1146_v31, %v917_v32  ;;  %v893_v39 = vld [vmem:[#allocation8 + $0x90] sm:$0xf0]  ;;  %v899_v40 = vld [vmem:[#allocation8 + $0x88] sm:$0xf]  ;;  %v892_v44 = vor.u32 %v1143_v36, %v891_v35 }
  0x22   :  { %v1144_v41 = vld [vmem:[#allocation8 + $0x94] sm:$0xf0]  ;;  %v1142_v42 = vld [vmem:[#allocation8 + $0x8c] sm:$0xf]  ;;  %v901_v43 = vld [vmem:[#allocation8 + $0x98] sm:$0xf0]  ;;  %v896_v45 = vor.u32 %v1141_v37, %v893_v39 }
  0x23   :  { %342 = vmatpush.bf16.msra.mxu0 %v908_v29  ;;  %v900_v46 = vor.u32 %v1144_v41, %v899_v40  ;;  %v875_v47 = vld [vmem:[#allocation8 + $0x60] sm:$0xf]  ;;  %v1139_v48 = vld [vmem:[#allocation8 + $0x6c] sm:$0xf0]  ;;  %v1137_v49 = vld [vmem:[#allocation8 + $0x64] sm:$0xf]  ;;  %v904_v50 = vor.u32 %v1142_v42, %v901_v43 }
  0x24   :  { %356 = vmatpush.bf16.msra.mxu1 %v912_v33  ;;  %v877_v51 = vld [vmem:[#allocation8 + $0x70] sm:$0xf0]  ;;  %v883_v52 = vld [vmem:[#allocation8 + $0x68] sm:$0xf]  ;;  %v1140_v53 = vld [vmem:[#allocation8 + $0x74] sm:$0xf0]  ;;  %v876_v56 = vor.u32 %v1139_v48, %v875_v47 }
  0x25   :  { %370 = vmatpush.bf16.msra.mxu2 %v916_v34  ;;  %384 = vmatpush.bf16.msra.mxu3 %v920_v38  ;;  %v1138_v54 = vld [vmem:[#allocation8 + $0x6c] sm:$0xf]  ;;  %v885_v55 = vld [vmem:[#allocation8 + $0x78] sm:$0xf0]  ;;  %v880_v57 = vor.u32 %v1137_v49, %v877_v51  ;;  %v884_v58 = vor.u32 %v1140_v53, %v883_v52  ;;  %v859_v59 = vld [vmem:[#allocation8 + $0x40] sm:$0xf] }
  0x26   :  { %v1135_v60 = vld [vmem:[#allocation8 + $0x4c] sm:$0xf0]  ;;  %v1133_v61 = vld [vmem:[#allocation8 + $0x44] sm:$0xf]  ;;  %v888_v62 = vor.u32 %v1138_v54, %v885_v55  ;;  %v861_v63 = vld [vmem:[#allocation8 + $0x50] sm:$0xf0] }
  0x27   :  { %343 = vmatpush.bf16.msra.mxu0 %v892_v44  ;;  %v867_v0 = vld [vmem:[#allocation8 + $0x48] sm:$0xf]  ;;  %v1136_v1 = vld [vmem:[#allocation8 + $0x54] sm:$0xf0]  ;;  %v1134_v2 = vld [vmem:[#allocation8 + $0x4c] sm:$0xf]  ;;  %v860_v4 = vor.u32 %v1135_v60, %v859_v59  ;;  %v864_v5 = vor.u32 %v1133_v61, %v861_v63 }
  0x28   :  { %357 = vmatpush.bf16.msra.mxu1 %v896_v45  ;;  %v869_v3 = vld [vmem:[#allocation8 + $0x58] sm:$0xf0]  ;;  %v868_v6 = vor.u32 %v1136_v1, %v867_v0  ;;  %v843_v7 = vld [vmem:[#allocation8 + $0x20] sm:$0xf]  ;;  %v1131_v8 = vld [vmem:[#allocation8 + $0x2c] sm:$0xf0] }
  0x29   :  { %371 = vmatpush.bf16.msra.mxu2 %v900_v46  ;;  %385 = vmatpush.bf16.msra.mxu3 %v904_v50  ;;  %v1129_v9 = vld [vmem:[#allocation8 + $0x24] sm:$0xf]  ;;  %v872_v10 = vor.u32 %v1134_v2, %v869_v3  ;;  %v845_v11 = vld [vmem:[#allocation8 + $0x30] sm:$0xf0]  ;;  %v851_v12 = vld [vmem:[#allocation8 + $0x28] sm:$0xf]  ;;  %v844_v16 = vor.u32 %v1131_v8, %v843_v7 }
  0x2a   :  { %v1132_v13 = vld [vmem:[#allocation8 + $0x34] sm:$0xf0]  ;;  %v1130_v14 = vld [vmem:[#allocation8 + $0x2c] sm:$0xf]  ;;  %v853_v15 = vld [vmem:[#allocation8 + $0x38] sm:$0xf0]  ;;  %v848_v19 = vor.u32 %v1129_v9, %v845_v11 }
  0x2b   :  { %344 = vmatpush.bf16.msra.mxu0 %v876_v56  ;;  %v827_v17 = vld [vmem:[#allocation8] sm:$0xf]  ;;  %v1127_v18 = vld [vmem:[#allocation8 + $0xc] sm:$0xf0]  ;;  %v852_v20 = vor.u32 %v1132_v13, %v851_v12  ;;  %v1125_v21 = vld [vmem:[#allocation8 + $0x4] sm:$0xf]  ;;  %v856_v24 = vor.u32 %v1130_v14, %v853_v15 }
  0x2c   :  { %358 = vmatpush.bf16.msra.mxu1 %v880_v57  ;;  %v829_v22 = vld [vmem:[#allocation8 + $0x10] sm:$0xf0]  ;;  %v835_v23 = vld [vmem:[#allocation8 + $0x8] sm:$0xf]  ;;  %v1128_v25 = vld [vmem:[#allocation8 + $0x14] sm:$0xf0]  ;;  %v828_v31 = vor.u32 %v1127_v18, %v827_v17 }
  0x2d   :  { %372 = vmatpush.bf16.msra.mxu2 %v884_v58  ;;  %386 = vmatpush.bf16.msra.mxu3 %v888_v62  ;;  %v1126_v26 = vld [vmem:[#allocation8 + $0xc] sm:$0xf]  ;;  %v837_v27 = vld [vmem:[#allocation8 + $0x18] sm:$0xf0]  ;;  %v1071_v28 = vld [vmem:[#allocation7 + $0xe0] sm:$0xf]  ;;  %v832_v35 = vor.u32 %v1125_v21, %v829_v22  ;;  %v836_v36 = vor.u32 %v1128_v25, %v835_v23 }
  0x2e   :  { %v1122_v29 = vld [vmem:[#allocation7 + $0xec] sm:$0xf0]  ;;  %v1120_v30 = vld [vmem:[#allocation7 + $0xe4] sm:$0xf]  ;;  %v1073_v32 = vld [vmem:[#allocation7 + $0xf0] sm:$0xf0]  ;;  %v840_v39 = vor.u32 %v1126_v26, %v837_v27 }
  0x2f   :  { %345 = vmatpush.bf16.msra.mxu0 %v860_v4  ;;  %v1079_v33 = vld [vmem:[#allocation7 + $0xe8] sm:$0xf]  ;;  %v1123_v34 = vld [vmem:[#allocation7 + $0xf4] sm:$0xf0]  ;;  %v1121_v37 = vld [vmem:[#allocation7 + $0xec] sm:$0xf]  ;;  %v1072_v40 = vor.u32 %v1122_v29, %v1071_v28  ;;  %v1076_v42 = vor.u32 %v1120_v30, %v1073_v32 }
  0x30   :  { %359 = vmatpush.bf16.msra.mxu1 %v864_v5  ;;  %v1081_v38 = vld [vmem:[#allocation7 + $0xf8] sm:$0xf0]  ;;  %v1055_v41 = vld [vmem:[#allocation7 + $0xc0] sm:$0xf]  ;;  %v1080_v43 = vor.u32 %v1123_v34, %v1079_v33  ;;  %v1118_v44 = vld [vmem:[#allocation7 + $0xcc] sm:$0xf0] }
  0x31   :  { %373 = vmatpush.bf16.msra.mxu2 %v868_v6  ;;  %387 = vmatpush.bf16.msra.mxu3 %v872_v10  ;;  %v1116_v45 = vld [vmem:[#allocation7 + $0xc4] sm:$0xf]  ;;  %v1057_v46 = vld [vmem:[#allocation7 + $0xd0] sm:$0xf0]  ;;  %v1084_v47 = vor.u32 %v1121_v37, %v1081_v38  ;;  %v1063_v48 = vld [vmem:[#allocation7 + $0xc8] sm:$0xf]  ;;  %v1056_v53 = vor.u32 %v1118_v44, %v1055_v41 }
  0x32   :  { %v1119_v49 = vld [vmem:[#allocation7 + $0xd4] sm:$0xf0]  ;;  %v1117_v51 = vld [vmem:[#allocation7 + $0xcc] sm:$0xf]  ;;  %v1065_v52 = vld [vmem:[#allocation7 + $0xd8] sm:$0xf0]  ;;  %v1060_v54 = vor.u32 %v1116_v45, %v1057_v46 }
  0x33   :  { %346 = vmatpush.bf16.msra.mxu0 %v844_v16  ;;  %v1124_v50 = vld [vmem:[#allocation5] sm:$0xff]  ;;  %v1064_v55 = vor.u32 %v1119_v49, %v1063_v48  ;;  %v1039_v56 = vld [vmem:[#allocation7 + $0xa0] sm:$0xf]  ;;  %v1114_v57 = vld [vmem:[#allocation7 + $0xac] sm:$0xf0]  ;;  %v1068_v59 = vor.u32 %v1117_v51, %v1065_v52  ;;  %v1391_v26 = vmov 0  }
  0x34   :  { %360 = vmatpush.bf16.msra.mxu1 %v848_v19  ;;  %v1112_v58 = vld [vmem:[#allocation7 + $0xa4] sm:$0xf]  ;;  %v1041_v60 = vld [vmem:[#allocation7 + $0xb0] sm:$0xf0]  ;;  %v1047_v61 = vld [vmem:[#allocation7 + $0xa8] sm:$0xf]  ;;  %v1040_v1 = vor.u32 %v1114_v57, %v1039_v56  ;;  %1171 = vset.pattern.permute.xlu0 %v1391_v26 }
  0x35   :  { %374 = vmatpush.bf16.msra.mxu2 %v852_v20  ;;  %388 = vmatpush.bf16.msra.mxu3 %v856_v24  ;;  %v1115_v62 = vld [vmem:[#allocation7 + $0xb4] sm:$0xf0]  ;;  %v1113_v63 = vld [vmem:[#allocation7 + $0xac] sm:$0xf]  ;;  %v1049_v0 = vld [vmem:[#allocation7 + $0xb8] sm:$0xf0]  ;;  %v1044_v2 = vor.u32 %v1112_v58, %v1041_v60 }
  0x36   :  { %v1048_v3 = vor.u32 %v1115_v62, %v1047_v61  ;;  %v1023_v4 = vld [vmem:[#allocation7 + $0x80] sm:$0xf]  ;;  %v1110_v5 = vld [vmem:[#allocation7 + $0x8c] sm:$0xf0]  ;;  %v1108_v6 = vld [vmem:[#allocation7 + $0x84] sm:$0xf]  ;;  %v1052_v7 = vor.u32 %v1113_v63, %v1049_v0 }
  0x37   :  { %347 = vmatpush.bf16.msra.mxu0 %v828_v31  ;;  %v1025_v8 = vld [vmem:[#allocation7 + $0x90] sm:$0xf0]  ;;  %v1031_v9 = vld [vmem:[#allocation7 + $0x88] sm:$0xf]  ;;  %v1111_v10 = vld [vmem:[#allocation7 + $0x94] sm:$0xf0]  ;;  %v1024_v13 = vor.u32 %v1110_v5, %v1023_v4 }
  0x38   :  { %361 = vmatpush.bf16.msra.mxu1 %v832_v35  ;;  %v1109_v11 = vld [vmem:[#allocation7 + $0x8c] sm:$0xf]  ;;  %v1033_v12 = vld [vmem:[#allocation7 + $0x98] sm:$0xf0]  ;;  %v1007_v14 = vld [vmem:[#allocation7 + $0x60] sm:$0xf]  ;;  %v1028_v15 = vor.u32 %v1108_v6, %v1025_v8  ;;  %v1032_v16 = vor.u32 %v1111_v10, %v1031_v9 }
  0x39   :  { %375 = vmatpush.bf16.msra.mxu2 %v836_v36  ;;  %389 = vmatpush.bf16.msra.mxu3 %v840_v39  ;;  %v1106_v17 = vld [vmem:[#allocation7 + $0x6c] sm:$0xf0]  ;;  %v1104_v18 = vld [vmem:[#allocation7 + $0x64] sm:$0xf]  ;;  %v1009_v19 = vld [vmem:[#allocation7 + $0x70] sm:$0xf0]  ;;  %v1036_v20 = vor.u32 %v1109_v11, %v1033_v12 }
  0x3a   :  { %348 = vmatmul.bf16.vlgmr.msra.gmra.mxu0 %v1124_v50  ;;  %v1015_v21 = vld [vmem:[#allocation7 + $0x68] sm:$0xf]  ;;  %v1107_v22 = vld [vmem:[#allocation7 + $0x74] sm:$0xf0]  ;;  %v752_v23 = vld [vmem:[%s1549_s6] sm:$0xff]  ;;  %v1008_v27 = vor.u32 %v1106_v17, %v1007_v14  ;;  %v1012_v28 = vor.u32 %v1104_v18, %v1009_v19  ;;  %s1392_s14 = smov [#allocation12]  }
  0x3b   :  { %562 = vmatpush.bf16.msrb.mxu0 %v1072_v40  ;;  %362 = vmatmul.bf16.vlgmr.msra.gmra.mxu1 %v1124_v50  ;;  %v1105_v24 = vld [vmem:[#allocation7 + $0x6c] sm:$0xf]  ;;  %v1017_v25 = vld [vmem:[#allocation7 + $0x78] sm:$0xf0]  ;;  %v1016_v29 = vor.u32 %v1107_v22, %v1015_v21  ;;  %v991_v30 = vld [vmem:[#allocation7 + $0x40] sm:$0xf] }
  0x3c   :  { %576 = vmatpush.bf16.msrb.mxu1 %v1076_v42  ;;  %390 = vmatmul.bf16.vlgmr.msra.gmra.mxu3 %v1124_v50  ;;  %v1102_v31 = vld [vmem:[#allocation7 + $0x4c] sm:$0xf0]  ;;  %v1100_v32 = vld [vmem:[#allocation7 + $0x44] sm:$0xf]  ;;  %v1020_v33 = vor.u32 %v1105_v24, %v1017_v25  ;;  %v993_v34 = vld [vmem:[#allocation7 + $0x50] sm:$0xf0] }
  0x3d   :  { %590 = vmatpush.bf16.msrb.mxu2 %v1080_v43  ;;  %604 = vmatpush.bf16.msrb.mxu3 %v1084_v47  ;;  %v999_v35 = vld [vmem:[#allocation7 + $0x48] sm:$0xf]  ;;  %v1103_v36 = vld [vmem:[#allocation7 + $0x54] sm:$0xf0]  ;;  %v1101_v37 = vld [vmem:[#allocation7 + $0x4c] sm:$0xf]  ;;  %v992_v39 = vor.u32 %v1102_v31, %v991_v30  ;;  %v996_v41 = vor.u32 %v1100_v32, %v993_v34 }
  0x3e   :  { %376 = vmatmul.bf16.vlgmr.msra.gmra.mxu2 %v1124_v50  ;;  %756 = vperm.xlu0 %1171, %v752_v23   ;;  %v1001_v38 = vld [vmem:[#allocation7 + $0x58] sm:$0xf0]  ;;  %v975_v40 = vld [vmem:[#allocation7 + $0x20] sm:$0xf]  ;;  %v1000_v42 = vor.u32 %v1103_v36, %v999_v35  ;;  %v1098_v43 = vld [vmem:[#allocation7 + $0x2c] sm:$0xf0] }
  0x3f   :  { %563 = vmatpush.bf16.msrb.mxu0 %v1056_v53  ;;  %v1096_v44 = vld [vmem:[#allocation7 + $0x24] sm:$0xf]  ;;  %v753_v45 = vld [vmem:[%s1549_s6 + $0x8] sm:$0xff]  ;;  %v1004_v46 = vor.u32 %v1101_v37, %v1001_v38  ;;  %v977_v47 = vld [vmem:[#allocation7 + $0x30] sm:$0xf0]  ;;  %v976_v52 = vor.u32 %v1098_v43, %v975_v40  ;;  %s799_s15 = sshll.u32 %s1392_s14, 4  ;;  %s800_s15 = int_to_ptr.vmem [resolvable:$true] %s799_s15 }
  0x40   :  { %577 = vmatpush.bf16.msrb.mxu1 %v1060_v54  ;;  %v983_v48 = vld [vmem:[#allocation7 + $0x28] sm:$0xf]  ;;  %v1099_v49 = vld [vmem:[#allocation7 + $0x34] sm:$0xf0]  ;;  %v1097_v50 = vld [vmem:[#allocation7 + $0x2c] sm:$0xf]  ;;  %v980_v53 = vor.u32 %v1096_v44, %v977_v47 }
  0x41   :  { %591 = vmatpush.bf16.msrb.mxu2 %v1064_v55  ;;  %605 = vmatpush.bf16.msrb.mxu3 %v1068_v59  ;;  %v985_v51 = vld [vmem:[#allocation7 + $0x38] sm:$0xf0]  ;;  %v984_v54 = vor.u32 %v1099_v49, %v983_v48  ;;  %v959_v55 = vld [vmem:[#allocation7] sm:$0xf]  ;;  %v1094_v56 = vld [vmem:[#allocation7 + $0xc] sm:$0xf0] }
  0x42   :  { %v1092_v57 = vld [vmem:[#allocation7 + $0x4] sm:$0xf]  ;;  %v988_v58 = vor.u32 %v1097_v50, %v985_v51  ;;  %v961_v59 = vld [vmem:[#allocation7 + $0x10] sm:$0xf0]  ;;  %v967_v60 = vld [vmem:[#allocation7 + $0x8] sm:$0xf]  ;;  %v960_v0 = vor.u32 %v1094_v56, %v959_v55 }
  0x43   :  { %564 = vmatpush.bf16.msrb.mxu0 %v1040_v1  ;;  %v1095_v61 = vld [vmem:[#allocation7 + $0x14] sm:$0xf0]  ;;  %v1093_v62 = vld [vmem:[#allocation7 + $0xc] sm:$0xf]  ;;  %v969_v63 = vld [vmem:[#allocation7 + $0x18] sm:$0xf0]  ;;  %v964_v1 = vor.u32 %v1092_v57, %v961_v59 }
  0x44   :  { %578 = vmatpush.bf16.msrb.mxu1 %v1044_v2  ;;  %v968_v2 = vor.u32 %v1095_v61, %v967_v60  ;;  %v1091_v4 = vld [vmem:[#allocation2] sm:$0xff]  ;;  %v1462_v11 = vld [vmem:[#allocation10] sm:$0xf]  ;;  %s801_s18 = sshll.u32 %s1551_s8, 4  ;;  %s1394_s8 = smov 8   ;;  %s802_s18 = int_to_ptr.hbm [resolvable:$true] %s801_s18 }
  0x45   :  { %592 = vmatpush.bf16.msrb.mxu2 %v1048_v3  ;;  %606 = vmatpush.bf16.msrb.mxu3 %v1052_v7  ;;  %v972_v3 = vor.u32 %v1093_v62, %v969_v63  ;;  %v623_v24 = vperm.slane %v1462_v11, 3  ;;  %v622_v49 = vperm.slane %v1462_v11, 2  ;;  %s1395_s19 = smov [#allocation11]   ;;  %s788_s22 = sshll.u32 %s1550_s7, 4  ;;  %s789_s22 = int_to_ptr.hbm [resolvable:$true] %s788_s22 }
  0x46   :  { %761 = vperm.xlu0 %1171, %v753_v45   ;;  %s786_s1 = sshll.u32 %s1395_s19, 4  ;;  %s787_s1 = int_to_ptr.vmem [resolvable:$true] %s786_s1 }
  0x47   :  { %565 = vmatpush.bf16.msrb.mxu0 %v1024_v13  ;;  %v620_v13 = vperm.slane %v1462_v11, 0 }
  0x48   :  { %579 = vmatpush.bf16.msrb.mxu1 %v1028_v15  ;;  %v621_v15 = vperm.slane %v1462_v11, 1 }
  0x49   :  { %593 = vmatpush.bf16.msrb.mxu2 %v1032_v16  ;;  %607 = vmatpush.bf16.msrb.mxu3 %v1036_v20 }
  0x4b   :  { %566 = vmatpush.bf16.msrb.mxu0 %v1008_v27 }
  0x4c   :  { %580 = vmatpush.bf16.msrb.mxu1 %v1012_v28 }
  0x4d   :  { %594 = vmatpush.bf16.msrb.mxu2 %v1016_v29  ;;  %608 = vmatpush.bf16.msrb.mxu3 %v1020_v33 }
  0x4f   :  { %567 = vmatpush.bf16.msrb.mxu0 %v992_v39 }
  0x50   :  { %581 = vmatpush.bf16.msrb.mxu1 %v996_v41 }
  0x51   :  { %595 = vmatpush.bf16.msrb.mxu2 %v1000_v42  ;;  %609 = vmatpush.bf16.msrb.mxu3 %v1004_v46 }
  0x53   :  { %568 = vmatpush.bf16.msrb.mxu0 %v976_v52 }
  0x54   :  { %582 = vmatpush.bf16.msrb.mxu1 %v980_v53 }
  0x55   :  { %596 = vmatpush.bf16.msrb.mxu2 %v984_v54  ;;  %610 = vmatpush.bf16.msrb.mxu3 %v988_v58 }
  0x57   :  { %569 = vmatpush.bf16.msrb.mxu0 %v960_v0 }
  0x58   :  { %583 = vmatpush.bf16.msrb.mxu1 %v964_v1 }
  0x59   :  { %597 = vmatpush.bf16.msrb.mxu2 %v968_v2  ;;  %611 = vmatpush.bf16.msrb.mxu3 %v972_v3 }
  0x5a   :  { %570 = vmatmul.bf16.vlgmr.msrb.gmra.mxu0 %v1091_v4 }
  0x5b   :  { %584 = vmatmul.bf16.vlgmr.msrb.gmra.mxu1 %v1091_v4 }
  0x5c   :  { %598 = vmatmul.bf16.vlgmr.msrb.gmra.mxu2 %v1091_v4  ;;  %612 = vmatmul.bf16.vlgmr.msrb.gmra.mxu3 %v1091_v4 }
  0xb7   :  { %v349_v5 = vpop.f32.mrf.mxu0 }
  0xb8   :  { %v363_v6 = vpop.f32.mrf.mxu1 }
  0xbf   :  { %v391_v7 = vpop.f32.mrf.mxu3  ;;  %v351_v8 = vpop.f32.mrf.mxu0 }
  0xc0   :  { %v365_v9 = vpop.f32.mrf.mxu1 }
  0xc1   :  { %v377_v10 = vpop.f32.mrf.mxu2 }
  0xc7   :  { %v393_v12 = vpop.f32.mrf.mxu3 }
  0xc9   :  { %v379_v19 = vpop.f32.mrf.mxu2 }
  0xd7   :  { %v571_v14 = vpop.f32.mrf.mxu0 }
  0xd8   :  { %v572_v16 = vadd.f32 %v571_v14, %v349_v5  ;;  %v585_v17 = vpop.f32.mrf.mxu1 }
  0xd9   :  { %v586_v18 = vadd.f32 %v585_v17, %v363_v6 }
  0xda   :  { %v628_v20 = vadd.f32 %v620_v13, %v572_v16 }
  0xdb   :  { %v629_v21 = vadd.f32 %v621_v15, %v586_v18 }
  0xdc   :  { %v1085_v22 = vmul.f32 -1.442695, %v628_v20 }
  0xdd   :  { %v1087_v23 = vmul.f32 -1.442695, %v629_v21  ;;  %v766_v21 = vld [vmem:[%s1548_s5] sm:$0xff] }
  0xde   :  { %1172 = vpow2.f32 %v1085_v22  ;;  %v757_v22 = vpop.permute.xlu0 %756 }
  0xdf   :  { %1174 = vpow2.f32 %v1087_v23  ;;  %v613_v25 = vpop.f32.mrf.mxu3  ;;  %v573_v26 = vpop.f32.mrf.mxu0 }
  0xe0   :  { %v614_v27 = vadd.f32 %v613_v25, %v391_v7  ;;  %v574_v28 = vadd.f32 %v573_v26, %v351_v8  ;;  %v587_v29 = vpop.f32.mrf.mxu1  ;;  %v599_v35 = vpop.f32.mrf.mxu2 }
  0xe1   :  { %v588_v30 = vadd.f32 %v587_v29, %v365_v9  ;;  %v600_v48 = vadd.f32 %v599_v35, %v377_v10 }
  0xe2   :  { %v631_v31 = vadd.f32 %v623_v24, %v614_v27  ;;  %v632_v32 = vadd.f32 %v620_v13, %v574_v28 }
  0xe3   :  { %v633_v33 = vadd.f32 %v621_v15, %v588_v30  ;;  %v630_v59 = vadd.f32 %v622_v49, %v600_v48 }
  0xe4   :  { %v1173_v34 = vpop.eup %1172  ;;  %v1089_v36 = vmul.f32 -1.442695, %v631_v31  ;;  %v1086_v39 = vmul.f32 -1.442695, %v632_v32 }
  0xe5   :  { %v1175_v37 = vpop.eup %1174  ;;  %v642_v38 = vadd.f32 1.0, %v1173_v34  ;;  %v1088_v41 = vmul.f32 -1.442695, %v633_v33 }
  0xe6   :  { %v680_v40 = vadd.f32 1.0, %v1175_v37  ;;  %1176 = vpow2.f32 %v1089_v36 }
  0xe7   :  { %1178 = vrcp.f32 %v642_v38  ;;  %v615_v42 = vpop.f32.mrf.mxu3  ;;  %vm649_vm0 = vweird.f32 %v642_v38  ;;  %v655_v0 = vand.u32 2147483648, %v642_v38  ;;  %v653_v5 = vand.u32 2147483647, %v642_v38 }
  0xe8   :  { %1180 = vrcp.f32 %v680_v40  ;;  %v616_v43 = vadd.f32 %v615_v42, %v393_v12  ;;  %v601_v53 = vpop.f32.mrf.mxu2  ;;  %v693_v2 = vand.u32 2147483648, %v680_v40  ;;  %v691_v6 = vand.u32 2147483647, %v680_v40 }
  0xe9   :  { %1182 = vpow2.f32 %v1086_v39  ;;  %v602_v61 = vadd.f32 %v601_v53, %v379_v19  ;;  %vm687_vm4 = vweird.f32 %v680_v40  ;;  %v656_v14 = vor.u32 1.1754944e-38, %v655_v0 }
  0xea   :  { %1184 = vpow2.f32 %v1088_v41  ;;  %v635_v44 = vadd.f32 %v623_v24, %v616_v43  ;;  %v694_v15 = vor.u32 1.1754944e-38, %v693_v2  ;;  %vm654_vm6 = vcmp.eq.f32.partialorder %v653_v5, 8.507059e+37 }
  0xeb   :  { %v634_v13 = vadd.f32 %v622_v49, %v602_v61  ;;  %vm692_vm7 = vcmp.eq.f32.partialorder %v691_v6, 8.507059e+37 }
  0xec   :  { %v1177_v45 = vpop.eup %1176  ;;  %v1090_v46 = vmul.f32 -1.442695, %v635_v44 }
  0xed   :  { %v1179_v47 = vpop.eup %1178  ;;  %v1468_v50 = vadd.f32 1.0, %v1177_v45 }
  0xee   :  { %v1181_v51 = vpop.eup %1180  ;;  %v645_v52 = vmul.f32 %v1179_v47, %v642_v38  ;;  %1186 = vpow2.f32 %v1090_v46  ;;  %vm650_vm1 = vweird.f32 %v1179_v47 }
  0xef   :  { %v1183_v54 = vpop.eup %1182  ;;  %1188 = vrcp.f32 %v1468_v50  ;;  %v683_v55 = vmul.f32 %v1181_v51, %v680_v40  ;;  %vm688_vm2 = vweird.f32 %v1181_v51  ;;  %vm1481_vm3 = vmor %vm649_vm0, %vm650_vm1  ;;  %vm727_vm12 = vweird.f32 %v1468_v50 }
  0xf0   :  { %v1185_v56 = vpop.eup %1184  ;;  %v1471_v57 = vadd.f32 1.0, %v1183_v54  ;;  %v646_v58 = vsub.f32 1.0, %v645_v52  ;;  %vm689_vm5 = vmor %vm687_vm4, %vm688_vm2  ;;  %v733_v44 = vand.u32 2147483648, %v1468_v50  ;;  %v731_v48 = vand.u32 2147483647, %v1468_v50 }
  0xf1   :  { %v1473_v60 = vadd.f32 1.0, %v1185_v56  ;;  %v684_v62 = vsub.f32 1.0, %v683_v55 }
  0xf2   :  { %1190 = vrcp.f32 %v1471_v57  ;;  %v647_v63 = vmul.f32 %v1179_v47, %v646_v58  ;;  %vm664_vm8 = vweird.f32 %v1471_v57  ;;  %v668_v32 = vand.u32 2147483647, %v1471_v57  ;;  %v762_v58 = vpop.permute.xlu0 %761 }
  0xf3   :  { %1192 = vrcp.f32 %v1473_v60  ;;  %v685_v1 = vmul.f32 %v1181_v51, %v684_v62  ;;  %v670_v36 = vand.u32 2147483648, %v1471_v57  ;;  %v706_v37 = vand.u32 2147483647, %v1473_v60 }
  0xf4   :  { %v1187_v3 = vpop.eup %1186  ;;  %v648_v4 = vadd.f32 %v1179_v47, %v647_v63  ;;  %1194 = vtanh.f32 %v630_v59  ;;  %v708_v40 = vand.u32 2147483648, %v1473_v60  ;;  %vm702_vm15 = vweird.f32 %v1473_v60 }
  0xf5   :  { %v1477_v7 = vpop.eup %1188  ;;  %v1479_v8 = vadd.f32 1.0, %v1187_v3  ;;  %v686_v10 = vadd.f32 %v1181_v51, %v685_v1  ;;  %v671_v53 = vor.u32 1.1754944e-38, %v670_v36  ;;  %vm669_vm1 = vcmp.eq.f32.partialorder %v668_v32, 8.507059e+37 }
  0xf6   :  { %v723_v11 = vmul.f32 %v1477_v7, %v1468_v50  ;;  %v652_v12 = vsel %vm1481_vm3, %v1179_v47, %v648_v4  ;;  %vm728_vm10 = vweird.f32 %v1477_v7  ;;  %v709_v54 = vor.u32 1.1754944e-38, %v708_v40  ;;  %v767_v50 = vld [vmem:[%s1548_s5 + $0x8] sm:$0xff]  ;;  %s1393_s5 = smov 128  }
  0xf7   :  { %1196 = vrcp.f32 %v1479_v8  ;;  %v690_v18 = vsel %vm689_vm5, %v1181_v51, %v686_v10  ;;  %v657_v23 = vsel %vm654_vm6, %v656_v14, %v652_v12  ;;  %vm1516_vm14 = vmor %vm727_vm12, %vm728_vm10  ;;  %vm707_vm2 = vcmp.eq.f32.partialorder %v706_v37, 8.507059e+37 }
  0xf8   :  { %v1191_v16 = vpop.eup %1190  ;;  %v724_v17 = vsub.f32 1.0, %v723_v11  ;;  %v695_v24 = vsel %vm692_vm7, %v694_v15, %v690_v18  ;;  %1198 = vtanh.f32 %v634_v13  ;;  %vm732_vm3 = vcmp.eq.f32.partialorder %v731_v48, 8.507059e+37 }
  0xf9   :  { %v1193_v19 = vpop.eup %1192  ;;  %v660_v20 = vmul.f32 %v1191_v16, %v1471_v57  ;;  %v764_v25 = vmul.f32 %v757_v22, %v695_v24  ;;  %vm665_vm9 = vweird.f32 %v1191_v16  ;;  %v734_v57 = vor.u32 1.1754944e-38, %v733_v44 }
  0xfa   :  { %v698_v26 = vmul.f32 %v1193_v19, %v1473_v60  ;;  %v1195_v27 = vpop.eup %1194  ;;  %v725_v28 = vmul.f32 %v1477_v7, %v724_v17  ;;  %vm703_vm11 = vweird.f32 %v1193_v19  ;;  %vm1512_vm13 = vmor %vm664_vm8, %vm665_vm9  ;;  %v748_v6 = vand.u32 2147483648, %v1479_v8 }
  0xfb   :  { %v661_v29 = vsub.f32 1.0, %v660_v20  ;;  %v768_v30 = vmul.f32 %v766_v21, %v764_v25  ;;  %v770_v31 = vmul.f32 %v1195_v27, %v657_v23  ;;  %vm704_vm0 = vmor %vm702_vm15, %vm703_vm11  ;;  %vm742_vm5 = vweird.f32 %v1479_v8 }
  0xfc   :  { %v699_v33 = vsub.f32 1.0, %v698_v26  ;;  %v726_v41 = vadd.f32 %v1477_v7, %v725_v28  ;;  %v749_v10 = vor.u32 1.1754944e-38, %v748_v6 }
  0xfd   :  { %v1498_v34 = vpop.eup %1196  ;;  %v662_v35 = vmul.f32 %v1191_v16, %v661_v29  ;;  %v772_v39 = vadd.f32 %v770_v31, %v768_v30 }
  0xfe   :  { %v738_v38 = vmul.f32 %v1498_v34, %v1479_v8  ;;  %v700_v43 = vmul.f32 %v1193_v19, %v699_v33  ;;  %v1199_v46 = vpop.eup %1198  ;;  %v730_v55 = vsel %vm1516_vm14, %v1477_v7, %v726_v41  ;;  %vm743_vm4 = vweird.f32 %v1498_v34 }
  0xff   :  { %v663_v42 = vadd.f32 %v1191_v16, %v662_v35  ;;  %1200 = vtanh.f32 %v772_v39  ;;  %780 = vst [vmem:[#allocation12] sm:$0xff] %v772_v39  ;;  %v735_v0 = vsel %vm732_vm3, %v734_v57, %v730_v55  ;;  %v746_v7 = vand.u32 2147483647, %v1479_v8  ;;  %vm744_vm6 = vmor %vm742_vm5, %vm743_vm4 }
 0x100   :  { %v701_v51 = vadd.f32 %v1193_v19, %v700_v43  ;;  %v739_v52 = vsub.f32 1.0, %v738_v38 }
 0x101   :  { %v667_v49 = vsel %vm1512_vm13, %v1191_v16, %v663_v42  ;;  %vm747_vm7 = vcmp.eq.f32.partialorder %v746_v7, 8.507059e+37 }
 0x102   :  { %v705_v56 = vsel %vm704_vm0, %v1193_v19, %v701_v51  ;;  %v672_v59 = vsel %vm669_vm1, %v671_v53, %v667_v49  ;;  %v740_v63 = vmul.f32 %v1498_v34, %v739_v52 }
 0x103   :  { %v710_v61 = vsel %vm707_vm2, %v709_v54, %v705_v56  ;;  %v771_v3 = vmul.f32 %v1199_v46, %v672_v59 }
 0x104   :  { %v765_v60 = vmul.f32 %v762_v58, %v710_v61  ;;  %v741_v5 = vadd.f32 %v1498_v34, %v740_v63 }
 0x105   :  { %v1201_v62 = vpop.eup %1200 }
 0x106   :  { %v776_v1 = vmul.f32 %v1201_v62, %v735_v0  ;;  %v769_v2 = vmul.f32 %v767_v50, %v765_v60  ;;  %v745_v9 = vsel %vm744_vm6, %v1498_v34, %v741_v5 }
 0x107   :  { %v750_v12 = vsel %vm747_vm7, %v749_v10, %v745_v9 }
 0x108   :  { %778 = vst [vmem:[#allocation11] sm:$0xff] %v776_v1  ;;  %v773_v4 = vadd.f32 %v771_v3, %v769_v2 }
 0x10a   :  { %1202 = vtanh.f32 %v773_v4  ;;  %781 = vst [vmem:[#allocation12 + $0x8] sm:$0xff] %v773_v4 }
 0x10b   :  { %807 = dma.vmem_to_hbm [thread:$0]  %s800_s15, 256, %s802_s18, [#allocation13], %s1393_s5, %s1393_s5, %s1394_s8  }
 0x110   :  { %v1203_v11 = vpop.eup %1202 }
 0x111   :  { %v777_v13 = vmul.f32 %v1203_v11, %v750_v12 }
 0x113   :  { %779 = vst [vmem:[#allocation11 + $0x8] sm:$0xff] %v777_v13 }
 0x114   :  { %794 = dma.vmem_to_hbm [thread:$0]  %s787_s1, 256, %s789_s22, [#allocation4], %s1393_s5, %s1393_s5, %s1394_s8  }
 0x115   :  { %1378 = dma.done.wait [#allocation4], 256  }
 0x116   :  { %1379 = vsyncadd [#allocation4], 4294967040 }
 0x117   :  { %1380 = dma.done.wait [#allocation13], 256  }
 0x118   :  { %1381 = vsyncadd [#allocation13], 4294967040 }
 0x119   :  { %816 = vsyncpa [#allocation3], 1 }
 0x11a   :  { %817 = vsyncpa [#allocation6], 1 }
 0x11b   :  { %818 = vsyncpa [#allocation9], 1 }
 0x11c   :  { %819 = vsyncpa [#allocation4], 1 }
 0x11d   :  { %820 = vsyncpa [#allocation13], 1 }

</bundles_post_ra>
